<compile_context>
chip_gen: v5e
topology: v5e:2x2
jax: 0.10.0
libtpu: 0.0.40
codegen_flags: <defaults>
</compile_context>

<pallas_src>
import functools

import jax
import jax.numpy as jnp
from jax.experimental import pallas as pl
from jax.experimental.pallas import tpu as pltpu


def lstm_linear_kernel(x_ref, p_ref, out_ref, *,
                       seq_len, batch, input_size, hidden, out_size):
    # x_ref: (B, T, I) float32
    # p_ref: (48, 4H) packed parameter slab:
    #   rows [0, I)        : w_ih^T            (I, 4H)
    #   rows [I, I+H)      : w_hh^T            (H, 4H)
    #   row  I+H           : b_ih + b_hh       (1, 4H)
    #   row  I+H+1         : [w_lin (H), b_lin (1), zeros]
    # out_ref: (1, B, O)
    I, H = input_size, hidden
    wih = p_ref[0:I, :]                    # (I, 4H)
    whh = p_ref[I:I + H, :]                # (H, 4H)
    bias = p_ref[I + H:I + H + 1, :]       # (1, 4H)
    lin_row = p_ref[I + H + 1:I + H + 2, :]  # (1, 4H)
    wlin = lin_row[:, 0:H]                 # (1, H)
    blin = lin_row[:, H:H + 1]             # (1, 1)

    # Hoisted input projection: all timesteps in a single MXU call, bias folded
    # in once.  (B*T, I) @ (I, 4H) + (1, 4H) -> (B*T, 4H), then viewed (B, T, 4H).
    x2d = x_ref[...].reshape(batch * seq_len, I)
    xproj = (
        jnp.dot(x2d, wih, preferred_element_type=jnp.float32) + bias
    ).reshape(batch, seq_len, 4 * H)

    h = jnp.zeros((batch, H), jnp.float32)
    c = jnp.zeros((batch, H), jnp.float32)

    # Fully-unrolled recurrence (static trip count).  Only the h @ Whh matmul
    # and the elementwise gate math are on the serial chain; the xproj slice is
    # precomputed and independent of h/c, so the scheduler can hoist it.
    for t in range(seq_len):
        gates = xproj[:, t, :] + jnp.dot(h, whh,
                                         preferred_element_type=jnp.float32)
        # Two full-vreg EUP passes over all 4H=128 lanes, then static slices.
        sig = jax.nn.sigmoid(gates)        # (B, 4H)
        tnh = jnp.tanh(gates)              # (B, 4H)
        i_g = sig[:, 0 * H:1 * H]
        f_g = sig[:, 1 * H:2 * H]
        g_g = tnh[:, 2 * H:3 * H]
        o_g = sig[:, 3 * H:4 * H]
        c = f_g * c + i_g * g_g
        h = o_g * jnp.tanh(c)

    # Final Linear (O=1): VPU multiply + cross-lane reduce instead of an MXU
    # pass with N=1.
    out = jnp.sum(h * wlin, axis=-1, keepdims=True) + blin   # (B, 1)
    out_ref[...] = out.reshape(1, batch, out_size).astype(out_ref.dtype)


def prepare_lstm_params(w_ih, w_hh, b_ih, b_hh, w_lin, b_lin):
    """One-time parameter packing (outside the per-call forward).

    Returns a single lane-aligned (48, 4H) f32 slab so the kernel needs only
    two input DMAs (x + params).
    """
    I = w_ih.shape[1]
    H = w_hh.shape[1]
    O = w_lin.shape[0]
    assert O == 1, "packed final-linear layout assumes output_size == 1"

    wih_t = jnp.transpose(w_ih, (1, 0)).astype(jnp.float32)   # (I, 4H)
    whh_t = jnp.transpose(w_hh, (1, 0)).astype(jnp.float32)   # (H, 4H)
    bias = (b_ih + b_hh).reshape(1, 4 * H).astype(jnp.float32)
    lin_row = jnp.zeros((1, 4 * H), jnp.float32)
    lin_row = lin_row.at[0, :H].set(w_lin[0, :].astype(jnp.float32))
    lin_row = lin_row.at[0, H].set(b_lin[0].astype(jnp.float32))

    rows = I + H + 2
    pad = (-rows) % 8   # keep slab (8,128)-sublane aligned
    slab = jnp.concatenate(
        [wih_t, whh_t, bias, lin_row, jnp.zeros((pad, 4 * H), jnp.float32)],
        axis=0)
    return slab


@functools.partial(jax.jit, static_argnames=())
def lstm_model_forward(x, params_slab):
    """x: (B, T, I) float32 (batch_first). Returns (num_layers=1, B, O)."""
    B, T, I = x.shape
    H = params_slab.shape[1] // 4
    O = 1

    kernel = functools.partial(lstm_linear_kernel, seq_len=T, batch=B,
                               input_size=I, hidden=H, out_size=O)

    return pl.pallas_call(
        kernel,
        out_shape=jax.ShapeDtypeStruct((1, B, O), jnp.float32),
        in_specs=[
            pl.BlockSpec(memory_space=pltpu.MemorySpace.VMEM),
            pl.BlockSpec(memory_space=pltpu.MemorySpace.VMEM),
        ],
        out_specs=pl.BlockSpec(memory_space=pltpu.MemorySpace.VMEM),
    )(x, params_slab)


def lstm_model_reference(x, w_ih, w_hh, b_ih, b_hh, w_lin, b_lin):
    """Pure-JAX reference with identical PyTorch LSTM semantics."""
    B, T, _ = x.shape
    H = w_hh.shape[1]
    h = jnp.zeros((B, H), jnp.float32)
    c = jnp.zeros((B, H), jnp.float32)
    for t in range(T):
        g = x[:, t, :] @ w_ih.T + h @ w_hh.T + b_ih + b_hh
        i_g = jax.nn.sigmoid(g[:, 0 * H:1 * H])
        f_g = jax.nn.sigmoid(g[:, 1 * H:2 * H])
        g_g = jnp.tanh(g[:, 2 * H:3 * H])
        o_g = jax.nn.sigmoid(g[:, 3 * H:4 * H])
        c = f_g * c + i_g * g_g
        h = o_g * jnp.tanh(c)
    out = h @ w_lin.T + b_lin
    return out.reshape(1, B, -1)


def _uniform(key, shape, bound):
    return jax.random.uniform(key, shape, jnp.float32, minval=-bound, maxval=bound)


if __name__ == "__main__":
    B, T, I, H, O = 2, 8, 8, 32, 1

    key = jax.random.PRNGKey(0)
    k_x, k1, k2, k3, k4, k5, k6 = jax.random.split(key, 7)

    # Deterministic parameter init (PyTorch-style U(-1/sqrt(H), 1/sqrt(H))).
    bound = 1.0 / jnp.sqrt(jnp.float32(H))
    w_ih = _uniform(k1, (4 * H, I), bound)   # weight_ih_l0
    w_hh = _uniform(k2, (4 * H, H), bound)   # weight_hh_l0
    b_ih = _uniform(k3, (4 * H,), bound)     # bias_ih_l0
    b_hh = _uniform(k4, (4 * H,), bound)     # bias_hh_l0
    w_lin = _uniform(k5, (O, H), bound)      # linear.weight
    b_lin = _uniform(k6, (O,), bound)        # linear.bias

    x = jax.random.normal(k_x, (B, T, I), jnp.float32)

    # One-time parameter packing (not part of the per-call forward).
    params_slab = jax.block_until_ready(
        prepare_lstm_params(w_ih, w_hh, b_ih, b_hh, w_lin, b_lin))

    out = lstm_model_forward(x, params_slab)
    jax.block_until_ready(out)

    ref = lstm_model_reference(x, w_ih, w_hh, b_ih, b_hh, w_lin, b_lin)
    assert out.shape == (1, B, O), out.shape
    assert jnp.allclose(out, ref, atol=1e-4, rtol=1e-4), (
        jnp.max(jnp.abs(out - ref)))
    print("KERNEL_OK")
</pallas_src>

<mosaic_0001>
module attributes {stable_mosaic.version = 11 : i64} {
  func.func @lstm_linear_kernel(%arg0: memref<2x8x8xf32, #tpu.memory_space<vmem>>, %arg1: memref<48x128xf32, #tpu.memory_space<vmem>>, %arg2: memref<1x2x1xf32, #tpu.memory_space<vmem>>) attributes {dimension_semantics = [], scalar_prefetch = 0 : i64, scratch_operands = 0 : i64, tpu.core_type = #tpu.core_type<tc>} {
    %c0 = arith.constant 0 : index
    %c0_0 = arith.constant 0 : index
    %0 = vector.load %arg1[%c0, %c0_0] : memref<48x128xf32, #tpu.memory_space<vmem>>, vector<8x128xf32>
    %c8 = arith.constant 8 : index
    %c0_1 = arith.constant 0 : index
    %1 = vector.load %arg1[%c8, %c0_1] : memref<48x128xf32, #tpu.memory_space<vmem>>, vector<32x128xf32>
    %c40 = arith.constant 40 : index
    %c0_2 = arith.constant 0 : index
    %2 = vector.load %arg1[%c40, %c0_2] : memref<48x128xf32, #tpu.memory_space<vmem>>, vector<1x128xf32>
    %c41 = arith.constant 41 : index
    %c0_3 = arith.constant 0 : index
    %3 = vector.load %arg1[%c41, %c0_3] : memref<48x128xf32, #tpu.memory_space<vmem>>, vector<1x128xf32>
    %4 = vector.extract_strided_slice %3 {offsets = [0, 0], sizes = [1, 32], strides = [1, 1]} : vector<1x128xf32> to vector<1x32xf32>
    %5 = vector.extract_strided_slice %3 {offsets = [0, 32], sizes = [1, 1], strides = [1, 1]} : vector<1x128xf32> to vector<1x1xf32>
    %c0_4 = arith.constant 0 : index
    %c0_5 = arith.constant 0 : index
    %c0_6 = arith.constant 0 : index
    %6 = vector.load %arg0[%c0_4, %c0_5, %c0_6] : memref<2x8x8xf32, #tpu.memory_space<vmem>>, vector<2x8x8xf32>
    %7 = vector.shape_cast %6 : vector<2x8x8xf32> to vector<16x8xf32>
    %cst = arith.constant dense<0.000000e+00> : vector<16x128xf32>
    %8 = tpu.matmul %7, %0, %cst {dimension_numbers = #tpu.dot_dimension_numbers<[1], [0], [0], [1], [0, 0, 1, 1], [], []>} : vector<16x8xf32>, vector<8x128xf32>, vector<16x128xf32> -> vector<16x128xf32>
    %9 = vector.broadcast %2 : vector<1x128xf32> to vector<16x128xf32>
    %10 = arith.addf %8, %9 : vector<16x128xf32>
    %11 = vector.shape_cast %10 : vector<16x128xf32> to vector<2x8x128xf32>
    %cst_7 = arith.constant 0.000000e+00 : f32
    %12 = vector.broadcast %cst_7 : f32 to vector<2x32xf32>
    %cst_8 = arith.constant 0.000000e+00 : f32
    %13 = vector.broadcast %cst_8 : f32 to vector<2x32xf32>
    %14 = vector.extract_strided_slice %11 {offsets = [0, 0, 0], sizes = [2, 1, 128], strides = [1, 1, 1]} : vector<2x8x128xf32> to vector<2x1x128xf32>
    %15 = vector.shape_cast %14 : vector<2x1x128xf32> to vector<2x128xf32>
    %cst_9 = arith.constant dense<0.000000e+00> : vector<2x128xf32>
    %16 = tpu.matmul %12, %1, %cst_9 {dimension_numbers = #tpu.dot_dimension_numbers<[1], [0], [0], [1], [0, 0, 1, 1], [], []>} : vector<2x32xf32>, vector<32x128xf32>, vector<2x128xf32> -> vector<2x128xf32>
    %17 = arith.addf %15, %16 : vector<2x128xf32>
    %18 = arith.negf %17 : vector<2x128xf32>
    %19 = math.exp %18 : vector<2x128xf32>
    %cst_10 = arith.constant 1.000000e+00 : f32
    %20 = vector.broadcast %cst_10 : f32 to vector<2x128xf32>
    %21 = arith.addf %20, %19 : vector<2x128xf32>
    %22 = arith.divf %20, %21 : vector<2x128xf32>
    %23 = math.tanh %17 : vector<2x128xf32>
    %24 = vector.extract_strided_slice %22 {offsets = [0, 0], sizes = [2, 32], strides = [1, 1]} : vector<2x128xf32> to vector<2x32xf32>
    %25 = vector.extract_strided_slice %22 {offsets = [0, 32], sizes = [2, 32], strides = [1, 1]} : vector<2x128xf32> to vector<2x32xf32>
    %26 = vector.extract_strided_slice %23 {offsets = [0, 64], sizes = [2, 32], strides = [1, 1]} : vector<2x128xf32> to vector<2x32xf32>
    %27 = vector.extract_strided_slice %22 {offsets = [0, 96], sizes = [2, 32], strides = [1, 1]} : vector<2x128xf32> to vector<2x32xf32>
    %28 = arith.mulf %25, %13 : vector<2x32xf32>
    %29 = arith.mulf %24, %26 : vector<2x32xf32>
    %30 = arith.addf %28, %29 : vector<2x32xf32>
    %31 = math.tanh %30 : vector<2x32xf32>
    %32 = arith.mulf %27, %31 : vector<2x32xf32>
    %33 = vector.extract_strided_slice %11 {offsets = [0, 1, 0], sizes = [2, 1, 128], strides = [1, 1, 1]} : vector<2x8x128xf32> to vector<2x1x128xf32>
    %34 = vector.shape_cast %33 : vector<2x1x128xf32> to vector<2x128xf32>
    %cst_11 = arith.constant dense<0.000000e+00> : vector<2x128xf32>
    %35 = tpu.matmul %32, %1, %cst_11 {dimension_numbers = #tpu.dot_dimension_numbers<[1], [0], [0], [1], [0, 0, 1, 1], [], []>} : vector<2x32xf32>, vector<32x128xf32>, vector<2x128xf32> -> vector<2x128xf32>
    %36 = arith.addf %34, %35 : vector<2x128xf32>
    %37 = arith.negf %36 : vector<2x128xf32>
    %38 = math.exp %37 : vector<2x128xf32>
    %cst_12 = arith.constant 1.000000e+00 : f32
    %39 = vector.broadcast %cst_12 : f32 to vector<2x128xf32>
    %40 = arith.addf %39, %38 : vector<2x128xf32>
    %41 = arith.divf %39, %40 : vector<2x128xf32>
    %42 = math.tanh %36 : vector<2x128xf32>
    %43 = vector.extract_strided_slice %41 {offsets = [0, 0], sizes = [2, 32], strides = [1, 1]} : vector<2x128xf32> to vector<2x32xf32>
    %44 = vector.extract_strided_slice %41 {offsets = [0, 32], sizes = [2, 32], strides = [1, 1]} : vector<2x128xf32> to vector<2x32xf32>
    %45 = vector.extract_strided_slice %42 {offsets = [0, 64], sizes = [2, 32], strides = [1, 1]} : vector<2x128xf32> to vector<2x32xf32>
    %46 = vector.extract_strided_slice %41 {offsets = [0, 96], sizes = [2, 32], strides = [1, 1]} : vector<2x128xf32> to vector<2x32xf32>
    %47 = arith.mulf %44, %30 : vector<2x32xf32>
    %48 = arith.mulf %43, %45 : vector<2x32xf32>
    %49 = arith.addf %47, %48 : vector<2x32xf32>
    %50 = math.tanh %49 : vector<2x32xf32>
    %51 = arith.mulf %46, %50 : vector<2x32xf32>
    %52 = vector.extract_strided_slice %11 {offsets = [0, 2, 0], sizes = [2, 1, 128], strides = [1, 1, 1]} : vector<2x8x128xf32> to vector<2x1x128xf32>
    %53 = vector.shape_cast %52 : vector<2x1x128xf32> to vector<2x128xf32>
    %cst_13 = arith.constant dense<0.000000e+00> : vector<2x128xf32>
    %54 = tpu.matmul %51, %1, %cst_13 {dimension_numbers = #tpu.dot_dimension_numbers<[1], [0], [0], [1], [0, 0, 1, 1], [], []>} : vector<2x32xf32>, vector<32x128xf32>, vector<2x128xf32> -> vector<2x128xf32>
    %55 = arith.addf %53, %54 : vector<2x128xf32>
    %56 = arith.negf %55 : vector<2x128xf32>
    %57 = math.exp %56 : vector<2x128xf32>
    %cst_14 = arith.constant 1.000000e+00 : f32
    %58 = vector.broadcast %cst_14 : f32 to vector<2x128xf32>
    %59 = arith.addf %58, %57 : vector<2x128xf32>
    %60 = arith.divf %58, %59 : vector<2x128xf32>
    %61 = math.tanh %55 : vector<2x128xf32>
    %62 = vector.extract_strided_slice %60 {offsets = [0, 0], sizes = [2, 32], strides = [1, 1]} : vector<2x128xf32> to vector<2x32xf32>
    %63 = vector.extract_strided_slice %60 {offsets = [0, 32], sizes = [2, 32], strides = [1, 1]} : vector<2x128xf32> to vector<2x32xf32>
    %64 = vector.extract_strided_slice %61 {offsets = [0, 64], sizes = [2, 32], strides = [1, 1]} : vector<2x128xf32> to vector<2x32xf32>
    %65 = vector.extract_strided_slice %60 {offsets = [0, 96], sizes = [2, 32], strides = [1, 1]} : vector<2x128xf32> to vector<2x32xf32>
    %66 = arith.mulf %63, %49 : vector<2x32xf32>
    %67 = arith.mulf %62, %64 : vector<2x32xf32>
    %68 = arith.addf %66, %67 : vector<2x32xf32>
    %69 = math.tanh %68 : vector<2x32xf32>
    %70 = arith.mulf %65, %69 : vector<2x32xf32>
    %71 = vector.extract_strided_slice %11 {offsets = [0, 3, 0], sizes = [2, 1, 128], strides = [1, 1, 1]} : vector<2x8x128xf32> to vector<2x1x128xf32>
    %72 = vector.shape_cast %71 : vector<2x1x128xf32> to vector<2x128xf32>
    %cst_15 = arith.constant dense<0.000000e+00> : vector<2x128xf32>
    %73 = tpu.matmul %70, %1, %cst_15 {dimension_numbers = #tpu.dot_dimension_numbers<[1], [0], [0], [1], [0, 0, 1, 1], [], []>} : vector<2x32xf32>, vector<32x128xf32>, vector<2x128xf32> -> vector<2x128xf32>
    %74 = arith.addf %72, %73 : vector<2x128xf32>
    %75 = arith.negf %74 : vector<2x128xf32>
    %76 = math.exp %75 : vector<2x128xf32>
    %cst_16 = arith.constant 1.000000e+00 : f32
    %77 = vector.broadcast %cst_16 : f32 to vector<2x128xf32>
    %78 = arith.addf %77, %76 : vector<2x128xf32>
    %79 = arith.divf %77, %78 : vector<2x128xf32>
    %80 = math.tanh %74 : vector<2x128xf32>
    %81 = vector.extract_strided_slice %79 {offsets = [0, 0], sizes = [2, 32], strides = [1, 1]} : vector<2x128xf32> to vector<2x32xf32>
    %82 = vector.extract_strided_slice %79 {offsets = [0, 32], sizes = [2, 32], strides = [1, 1]} : vector<2x128xf32> to vector<2x32xf32>
    %83 = vector.extract_strided_slice %80 {offsets = [0, 64], sizes = [2, 32], strides = [1, 1]} : vector<2x128xf32> to vector<2x32xf32>
    %84 = vector.extract_strided_slice %79 {offsets = [0, 96], sizes = [2, 32], strides = [1, 1]} : vector<2x128xf32> to vector<2x32xf32>
    %85 = arith.mulf %82, %68 : vector<2x32xf32>
    %86 = arith.mulf %81, %83 : vector<2x32xf32>
    %87 = arith.addf %85, %86 : vector<2x32xf32>
    %88 = math.tanh %87 : vector<2x32xf32>
    %89 = arith.mulf %84, %88 : vector<2x32xf32>
    %90 = vector.extract_strided_slice %11 {offsets = [0, 4, 0], sizes = [2, 1, 128], strides = [1, 1, 1]} : vector<2x8x128xf32> to vector<2x1x128xf32>
    %91 = vector.shape_cast %90 : vector<2x1x128xf32> to vector<2x128xf32>
    %cst_17 = arith.constant dense<0.000000e+00> : vector<2x128xf32>
    %92 = tpu.matmul %89, %1, %cst_17 {dimension_numbers = #tpu.dot_dimension_numbers<[1], [0], [0], [1], [0, 0, 1, 1], [], []>} : vector<2x32xf32>, vector<32x128xf32>, vector<2x128xf32> -> vector<2x128xf32>
    %93 = arith.addf %91, %92 : vector<2x128xf32>
    %94 = arith.negf %93 : vector<2x128xf32>
    %95 = math.exp %94 : vector<2x128xf32>
    %cst_18 = arith.constant 1.000000e+00 : f32
    %96 = vector.broadcast %cst_18 : f32 to vector<2x128xf32>
    %97 = arith.addf %96, %95 : vector<2x128xf32>
    %98 = arith.divf %96, %97 : vector<2x128xf32>
    %99 = math.tanh %93 : vector<2x128xf32>
    %100 = vector.extract_strided_slice %98 {offsets = [0, 0], sizes = [2, 32], strides = [1, 1]} : vector<2x128xf32> to vector<2x32xf32>
    %101 = vector.extract_strided_slice %98 {offsets = [0, 32], sizes = [2, 32], strides = [1, 1]} : vector<2x128xf32> to vector<2x32xf32>
    %102 = vector.extract_strided_slice %99 {offsets = [0, 64], sizes = [2, 32], strides = [1, 1]} : vector<2x128xf32> to vector<2x32xf32>
    %103 = vector.extract_strided_slice %98 {offsets = [0, 96], sizes = [2, 32], strides = [1, 1]} : vector<2x128xf32> to vector<2x32xf32>
    %104 = arith.mulf %101, %87 : vector<2x32xf32>
    %105 = arith.mulf %100, %102 : vector<2x32xf32>
    %106 = arith.addf %104, %105 : vector<2x32xf32>
    %107 = math.tanh %106 : vector<2x32xf32>
    %108 = arith.mulf %103, %107 : vector<2x32xf32>
    %109 = vector.extract_strided_slice %11 {offsets = [0, 5, 0], sizes = [2, 1, 128], strides = [1, 1, 1]} : vector<2x8x128xf32> to vector<2x1x128xf32>
    %110 = vector.shape_cast %109 : vector<2x1x128xf32> to vector<2x128xf32>
    %cst_19 = arith.constant dense<0.000000e+00> : vector<2x128xf32>
    %111 = tpu.matmul %108, %1, %cst_19 {dimension_numbers = #tpu.dot_dimension_numbers<[1], [0], [0], [1], [0, 0, 1, 1], [], []>} : vector<2x32xf32>, vector<32x128xf32>, vector<2x128xf32> -> vector<2x128xf32>
    %112 = arith.addf %110, %111 : vector<2x128xf32>
    %113 = arith.negf %112 : vector<2x128xf32>
    %114 = math.exp %113 : vector<2x128xf32>
    %cst_20 = arith.constant 1.000000e+00 : f32
    %115 = vector.broadcast %cst_20 : f32 to vector<2x128xf32>
    %116 = arith.addf %115, %114 : vector<2x128xf32>
    %117 = arith.divf %115, %116 : vector<2x128xf32>
    %118 = math.tanh %112 : vector<2x128xf32>
    %119 = vector.extract_strided_slice %117 {offsets = [0, 0], sizes = [2, 32], strides = [1, 1]} : vector<2x128xf32> to vector<2x32xf32>
    %120 = vector.extract_strided_slice %117 {offsets = [0, 32], sizes = [2, 32], strides = [1, 1]} : vector<2x128xf32> to vector<2x32xf32>
    %121 = vector.extract_strided_slice %118 {offsets = [0, 64], sizes = [2, 32], strides = [1, 1]} : vector<2x128xf32> to vector<2x32xf32>
    %122 = vector.extract_strided_slice %117 {offsets = [0, 96], sizes = [2, 32], strides = [1, 1]} : vector<2x128xf32> to vector<2x32xf32>
    %123 = arith.mulf %120, %106 : vector<2x32xf32>
    %124 = arith.mulf %119, %121 : vector<2x32xf32>
    %125 = arith.addf %123, %124 : vector<2x32xf32>
    %126 = math.tanh %125 : vector<2x32xf32>
    %127 = arith.mulf %122, %126 : vector<2x32xf32>
    %128 = vector.extract_strided_slice %11 {offsets = [0, 6, 0], sizes = [2, 1, 128], strides = [1, 1, 1]} : vector<2x8x128xf32> to vector<2x1x128xf32>
    %129 = vector.shape_cast %128 : vector<2x1x128xf32> to vector<2x128xf32>
    %cst_21 = arith.constant dense<0.000000e+00> : vector<2x128xf32>
    %130 = tpu.matmul %127, %1, %cst_21 {dimension_numbers = #tpu.dot_dimension_numbers<[1], [0], [0], [1], [0, 0, 1, 1], [], []>} : vector<2x32xf32>, vector<32x128xf32>, vector<2x128xf32> -> vector<2x128xf32>
    %131 = arith.addf %129, %130 : vector<2x128xf32>
    %132 = arith.negf %131 : vector<2x128xf32>
    %133 = math.exp %132 : vector<2x128xf32>
    %cst_22 = arith.constant 1.000000e+00 : f32
    %134 = vector.broadcast %cst_22 : f32 to vector<2x128xf32>
    %135 = arith.addf %134, %133 : vector<2x128xf32>
    %136 = arith.divf %134, %135 : vector<2x128xf32>
    %137 = math.tanh %131 : vector<2x128xf32>
    %138 = vector.extract_strided_slice %136 {offsets = [0, 0], sizes = [2, 32], strides = [1, 1]} : vector<2x128xf32> to vector<2x32xf32>
    %139 = vector.extract_strided_slice %136 {offsets = [0, 32], sizes = [2, 32], strides = [1, 1]} : vector<2x128xf32> to vector<2x32xf32>
    %140 = vector.extract_strided_slice %137 {offsets = [0, 64], sizes = [2, 32], strides = [1, 1]} : vector<2x128xf32> to vector<2x32xf32>
    %141 = vector.extract_strided_slice %136 {offsets = [0, 96], sizes = [2, 32], strides = [1, 1]} : vector<2x128xf32> to vector<2x32xf32>
    %142 = arith.mulf %139, %125 : vector<2x32xf32>
    %143 = arith.mulf %138, %140 : vector<2x32xf32>
    %144 = arith.addf %142, %143 : vector<2x32xf32>
    %145 = math.tanh %144 : vector<2x32xf32>
    %146 = arith.mulf %141, %145 : vector<2x32xf32>
    %147 = vector.extract_strided_slice %11 {offsets = [0, 7, 0], sizes = [2, 1, 128], strides = [1, 1, 1]} : vector<2x8x128xf32> to vector<2x1x128xf32>
    %148 = vector.shape_cast %147 : vector<2x1x128xf32> to vector<2x128xf32>
    %cst_23 = arith.constant dense<0.000000e+00> : vector<2x128xf32>
    %149 = tpu.matmul %146, %1, %cst_23 {dimension_numbers = #tpu.dot_dimension_numbers<[1], [0], [0], [1], [0, 0, 1, 1], [], []>} : vector<2x32xf32>, vector<32x128xf32>, vector<2x128xf32> -> vector<2x128xf32>
    %150 = arith.addf %148, %149 : vector<2x128xf32>
    %151 = arith.negf %150 : vector<2x128xf32>
    %152 = math.exp %151 : vector<2x128xf32>
    %cst_24 = arith.constant 1.000000e+00 : f32
    %153 = vector.broadcast %cst_24 : f32 to vector<2x128xf32>
    %154 = arith.addf %153, %152 : vector<2x128xf32>
    %155 = arith.divf %153, %154 : vector<2x128xf32>
    %156 = math.tanh %150 : vector<2x128xf32>
    %157 = vector.extract_strided_slice %155 {offsets = [0, 0], sizes = [2, 32], strides = [1, 1]} : vector<2x128xf32> to vector<2x32xf32>
    %158 = vector.extract_strided_slice %155 {offsets = [0, 32], sizes = [2, 32], strides = [1, 1]} : vector<2x128xf32> to vector<2x32xf32>
    %159 = vector.extract_strided_slice %156 {offsets = [0, 64], sizes = [2, 32], strides = [1, 1]} : vector<2x128xf32> to vector<2x32xf32>
    %160 = vector.extract_strided_slice %155 {offsets = [0, 96], sizes = [2, 32], strides = [1, 1]} : vector<2x128xf32> to vector<2x32xf32>
    %161 = arith.mulf %158, %144 : vector<2x32xf32>
    %162 = arith.mulf %157, %159 : vector<2x32xf32>
    %163 = arith.addf %161, %162 : vector<2x32xf32>
    %164 = math.tanh %163 : vector<2x32xf32>
    %165 = arith.mulf %160, %164 : vector<2x32xf32>
    %166 = vector.broadcast %4 : vector<1x32xf32> to vector<2x32xf32>
    %167 = arith.mulf %165, %166 : vector<2x32xf32>
    %cst_25 = arith.constant dense<0.000000e+00> : vector<2xf32>
    %168 = vector.multi_reduction <add>, %167, %cst_25 [1] : vector<2x32xf32> to vector<2xf32>
    %169 = vector.shape_cast %168 : vector<2xf32> to vector<2x1xf32>
    %170 = vector.broadcast %5 : vector<1x1xf32> to vector<2x1xf32>
    %171 = arith.addf %169, %170 : vector<2x1xf32>
    %172 = vector.shape_cast %171 : vector<2x1xf32> to vector<1x2x1xf32>
    %c0_26 = arith.constant 0 : index
    %c0_27 = arith.constant 0 : index
    %c0_28 = arith.constant 0 : index
    %173 = vector.load %arg2[%c0_26, %c0_27, %c0_28] : memref<1x2x1xf32, #tpu.memory_space<vmem>>, vector<1x2x1xf32>
    tpu.vector_store %arg2[%c0_26, %c0_27, %c0_28], %172 {strides = array<i32>} : memref<1x2x1xf32, #tpu.memory_space<vmem>>, vector<1x2x1xf32>,
    return
  }
}

</mosaic_0001>

<bundles_post_ra>
// kernel: lstm_model_forward.1
= control target key start
LH: loop header
LB: loop body
LE: loop exit
PB: predicated region body
PF: predicated region fallthrough
CT: control target
= control target key end

     0   :  { %7 = vsyncpa [#allocation3], 0  ;;  %s1443_s0 = inlined_call_operand.hbm [shape: f32[2,8,8], index: 0, kind: input, shape index: {}]   ;;  %s1444_s1 = inlined_call_operand.hbm [shape: f32[48,128], index: 1, kind: input, shape index: {}]   ;;  %s1445_s2 = inlined_call_operand.vmem [shape: f32[1,2,1], index: 2, kind: output, shape index: {}]  }
   0x1   :  { %s13_s11 = sshll.u32 %s1443_s0, 4  ;;  %s14_s11 = int_to_ptr.hbm [resolvable:$true] %s13_s11 }
   0x2   :  { %8 = vsyncpa [#allocation5], 0  ;;  %s1256_s12 = smov [#allocation2]   ;;  %s26_s16 = sshll.u32 %s1444_s1, 4  ;;  %s27_s16 = int_to_ptr.hbm [resolvable:$true] %s26_s16 }
   0x3   :  { %s15_s13 = sshll.u32 %s1256_s12, 4  ;;  %s1257_s17 = smov 128   ;;  %s16_s13 = int_to_ptr.vmem [resolvable:$true] %s15_s13 }
   0x4   :  { %s1258_s18 = smov 8   ;;  %s1259_s19 = smov [#allocation4]  }
   0x5   :  { %21 = dma.hbm_to_vmem [thread:$0]  %s14_s11, 256, %s16_s13, [#allocation3], %s1257_s17, %s1257_s17, %s1258_s18  }
   0x6   :  { %s28_s20 = sshll.u32 %s1259_s19, 4  ;;  %s29_s20 = int_to_ptr.vmem [resolvable:$true] %s28_s20 }
   0x7   :  { %34 = dma.hbm_to_vmem [thread:$0]  %s27_s16, 768, %s29_s20, [#allocation5], %s1257_s17, %s1257_s17, %s1258_s18  }
   0x8   :  { %1252 = dma.done.wait [#allocation3], 256  }
   0x9   :  { %1253 = vsyncadd [#allocation3], 4294967040 }
   0xa   :  { %1254 = dma.done.wait [#allocation5], 768  }
   0xb   :  { %1255 = vsyncadd [#allocation5], 4294966528  ;;  %vm53_vm0 = vcmask 64512   ;;  %v43_v0 = vld [vmem:[#allocation4] sm:$0xff]  ;;  %v50_v2 = vld [vmem:[#allocation2] sm:$0xff]  ;;  %v1260_v7 = vmov 0.0  }
   0xc   :  { %v47_v1 = vld [vmem:[#allocation4 + $0x20] sm:$0xff]  ;;  %75 = vmatpush.msra.mxu0 %v43_v0  ;;  %v46_v3 = vld [vmem:[#allocation4 + $0x18] sm:$0xff]  ;;  %v45_v4 = vld [vmem:[#allocation4 + $0x10] sm:$0xff]  ;;  %s1261_s0 = smov 64   ;;  %s1262_s1 = smov 32   ;;  %vm190_vm9 = vcmask 1041409  }
   0xd   :  { %99 = vmatpush.msra.mxu1 %v47_v1  ;;  %1041 = vmatmul.msk.f32.vlgmr.msra.gmra.mxu0 %vm53_vm0, %v50_v2  ;;  %v44_v5 = vld [vmem:[#allocation4 + $0x8] sm:$0xff]  ;;  %v51_v6 = vld [vmem:[#allocation2 + $0x8] sm:$0xff]  ;;  %vm83_vm10 = vcmask 261120   ;;  %s1263_s21 = smov 96  }
   0xe   :  { %208 = vmatpush.msra.mxu2 %v47_v1  ;;  %322 = vmatpush.msra.mxu3 %v47_v1  ;;  %v1074_v10 = vld [vmem:[#allocation4 + $0x28] ss:$0 sm:$0xff] }
   0xf   :  { %100 = vmatpush.msra.mxu1 %v46_v3  ;;  %786 = vmatpush.msrb.mxu0 %v47_v1 }
  0x10   :  { %209 = vmatpush.msra.mxu2 %v46_v3  ;;  %323 = vmatpush.msra.mxu3 %v46_v3 }
  0x11   :  { %101 = vmatpush.msra.mxu1 %v45_v4  ;;  %787 = vmatpush.msrb.mxu0 %v46_v3 }
  0x12   :  { %210 = vmatpush.msra.mxu2 %v45_v4  ;;  %324 = vmatpush.msra.mxu3 %v45_v4 }
  0x13   :  { %102 = vmatpush.msra.mxu1 %v44_v5  ;;  %788 = vmatpush.msrb.mxu0 %v45_v4 }
  0x14   :  { %103 = vmatmul.f32.vlgmr.msra.gmra.mxu1 %v1260_v7  ;;  %211 = vmatpush.msra.mxu2 %v44_v5 }
  0x15   :  { %325 = vmatpush.msra.mxu3 %v44_v5  ;;  %438 = vmatpush.msrb.mxu1 %v47_v1 }
  0x16   :  { %1042 = vmatmul.msk.f32.gmra.mxu0 %vm53_vm0, %v51_v6  ;;  %554 = vmatpush.msrb.mxu2 %v47_v1 }
  0x17   :  { %439 = vmatpush.msrb.mxu1 %v46_v3  ;;  %670 = vmatpush.msrb.mxu3 %v47_v1 }
  0x18   :  { %555 = vmatpush.msrb.mxu2 %v46_v3  ;;  %789 = vmatpush.msrb.mxu0 %v44_v5 }
  0x19   :  { %440 = vmatpush.msrb.mxu1 %v45_v4  ;;  %671 = vmatpush.msrb.mxu3 %v46_v3 }
  0x1a   :  { %556 = vmatpush.msrb.mxu2 %v45_v4 }
  0x1b   :  { %441 = vmatpush.msrb.mxu1 %v44_v5  ;;  %672 = vmatpush.msrb.mxu3 %v45_v4 }
  0x1c   :  { %557 = vmatpush.msrb.mxu2 %v44_v5 }
  0x1d   :  { %902 = vmatpush.msra.mxu1 %v47_v1  ;;  %673 = vmatpush.msrb.mxu3 %v44_v5 }
  0x1f   :  { %903 = vmatpush.msra.mxu1 %v46_v3 }
  0x21   :  { %904 = vmatpush.msra.mxu1 %v45_v4 }
  0x23   :  { %905 = vmatpush.msra.mxu1 %v44_v5 }
  0x8a   :  { %v77_v8 = vpop.f32.mrf.mxu0 }
  0x8b   :  { %v1290_v15 = vadd.f32 %v1074_v10, %v77_v8 }
  0x91   :  { %v104_v9 = vpop.f32.mrf.mxu1 }
  0x92   :  { %v108_v11 = vrot.slane %v104_v9, 1  ;;  %v111_v16 = vadd.f32 %v104_v9, %v1290_v15 }
  0x93   :  { %v80_v12 = vpop.f32.mrf.mxu0 }
  0x94   :  { %v1287_v13 = vadd.f32 %v1074_v10, %v80_v12  ;;  %v1043_v20 = vmul.f32 -1.442695, %v111_v16 }
  0x96   :  { %v112_v14 = vadd.f32 %v108_v11, %v1287_v13 }
  0x98   :  { %1076 = vtanh.f32 %v112_v14  ;;  %v1044_v19 = vmul.f32 -1.442695, %v112_v14 }
  0x99   :  { %1078 = vtanh.f32 %v111_v16 }
  0x9a   :  { %1080 = vpow2.f32 %v1044_v19 }
  0x9b   :  { %1082 = vpow2.f32 %v1043_v20 }
  0x9e   :  { %v1077_v17 = vpop.eup %1076 }
  0x9f   :  { %159 = vrot.lane.b32.xlu0 %v1077_v17, %s1261_s0  ;;  %v1079_v18 = vpop.eup %1078 }
  0xa0   :  { %v1081_v21 = vpop.eup %1080 }
  0xa1   :  { %v120_v22 = vadd.f32 1.0, %v1081_v21  ;;  %v1083_v23 = vpop.eup %1082 }
  0xa2   :  { %v119_v24 = vadd.f32 1.0, %v1083_v23 }
  0xa3   :  { %1084 = vrcp.f32 %v120_v22  ;;  %v147_v33 = vand.u32 2147483648, %v120_v22  ;;  %vm141_vm2 = vweird.f32 %v120_v22  ;;  %v145_v34 = vand.u32 2147483647, %v120_v22 }
  0xa4   :  { %1086 = vrcp.f32 %v119_v24  ;;  %v132_v42 = vand.u32 2147483648, %v119_v24  ;;  %vm126_vm6 = vweird.f32 %v119_v24  ;;  %v130_v43 = vand.u32 2147483647, %v119_v24 }
  0xa5   :  { %v148_v37 = vor.u32 1.1754944e-38, %v147_v33  ;;  %vm146_vm4 = vcmp.eq.f32.partialorder %v145_v34, 8.507059e+37 }
  0xa6   :  { %v133_v45 = vor.u32 1.1754944e-38, %v132_v42  ;;  %vm131_vm8 = vcmp.eq.f32.partialorder %v130_v43, 8.507059e+37 }
  0xa7   :  { %157 = vrot.lane.b32.xlu0 %v1079_v18, %s1261_s0 }
  0xa9   :  { %v1085_v25 = vpop.eup %1084 }
  0xaa   :  { %v137_v26 = vmul.f32 %v1085_v25, %v120_v22  ;;  %v1087_v28 = vpop.eup %1086  ;;  %vm142_vm1 = vweird.f32 %v1085_v25 }
  0xab   :  { %v122_v30 = vmul.f32 %v1087_v28, %v119_v24  ;;  %vm143_vm3 = vmor %vm141_vm2, %vm142_vm1  ;;  %vm127_vm5 = vweird.f32 %v1087_v28 }
  0xac   :  { %v138_v27 = vsub.f32 1.0, %v137_v26  ;;  %vm128_vm7 = vmor %vm126_vm6, %vm127_vm5 }
  0xad   :  { %v123_v32 = vsub.f32 1.0, %v122_v30 }
  0xae   :  { %v139_v29 = vmul.f32 %v1085_v25, %v138_v27 }
  0xaf   :  { %v124_v36 = vmul.f32 %v1087_v28, %v123_v32 }
  0xb0   :  { %v140_v31 = vadd.f32 %v1085_v25, %v139_v29 }
  0xb1   :  { %v125_v41 = vadd.f32 %v1087_v28, %v124_v36 }
  0xb2   :  { %v144_v35 = vsel %vm143_vm3, %v1085_v25, %v140_v31 }
  0xb3   :  { %v149_v39 = vsel %vm146_vm4, %v148_v37, %v144_v35  ;;  %v129_v44 = vsel %vm128_vm7, %v1087_v28, %v125_v41 }
  0xb4   :  { %v134_v47 = vsel %vm131_vm8, %v133_v45, %v129_v44  ;;  %v154_v49 = vmul.f32 0.0, %v149_v39 }
  0xb5   :  { %v153_v52 = vmul.f32 0.0, %v134_v47 }
 0x111   :  { %v160_v38 = vpop.permute.xlu0 %159 }
 0x112   :  { %v164_v40 = vmul.f32 %v160_v38, %v149_v39 }
 0x114   :  { %169 = vrot.lane.b32.xlu1 %v164_v40, %s1262_s1 }
 0x119   :  { %v158_v46 = vpop.permute.xlu0 %157 }
 0x11a   :  { %v163_v48 = vmul.f32 %v158_v46, %v134_v47 }
 0x11c   :  { %167 = vrot.lane.b32.xlu1 %v163_v48, %s1262_s1 }
 0x186   :  { %v170_v50 = vpop.permute.xlu1 %169 }
 0x187   :  { %v1297_v51 = vadd.f32 %v170_v50, %v154_v49 }
 0x189   :  { %1088 = vtanh.f32 %v1297_v51  ;;  %v265_v38 = vrot.slane %v1297_v51, 7 }
 0x18e   :  { %v168_v53 = vpop.permute.xlu1 %167 }
 0x18f   :  { %v1089_v54 = vpop.eup %1088  ;;  %v1300_v55 = vadd.f32 %v168_v53, %v153_v52 }
 0x190   :  { %181 = vrot.lane.b32.xlu2 %v1089_v54, %s1261_s0 }
 0x191   :  { %1090 = vtanh.f32 %v1300_v55  ;;  %v264_v43 = vrot.slane %v1300_v55, 7 }
 0x197   :  { %v1091_v56 = vpop.eup %1090 }
 0x198   :  { %179 = vrot.lane.b32.xlu2 %v1091_v56, %s1261_s0 }
 0x1ea   :  { %v182_v57 = vpop.permute.xlu2 %181 }
 0x1eb   :  { %v186_v58 = vmul.f32 %v182_v57, %v149_v39 }
 0x1ed   :  { %v189_v60 = vrot.slane %v186_v58, 7 }
 0x1f2   :  { %v180_v59 = vpop.permute.xlu2 %179 }
 0x1f3   :  { %v185_v61 = vmul.f32 %v180_v59, %v134_v47 }
 0x1f5   :  { %v191_v62 = vsel %vm190_vm9, %v189_v60, %v185_v61 }
 0x1f6   :  { %192 = vrot.lane.b32.xlu0 %v191_v62, %s1262_s1 }
 0x268   :  { %v193_v63 = vpop.permute.xlu0 %192 }
 0x269   :  { %1045 = vmatmul.msk.f32.vlgmr.msra.gmra.mxu2 %vm83_vm10, %v193_v63 }
 0x2ec   :  { %v213_v0 = vpop.f32.mrf.mxu2 }
 0x2ed   :  { %v217_v1 = vrot.slane %v213_v0, 7  ;;  %v221_v2 = vadd.f32 %v213_v0, %v1287_v13 }
 0x2ef   :  { %v220_v3 = vadd.f32 %v217_v1, %v1290_v15  ;;  %1092 = vtanh.f32 %v221_v2  ;;  %v1047_v6 = vmul.f32 -1.442695, %v221_v2 }
 0x2f1   :  { %1094 = vtanh.f32 %v220_v3  ;;  %v1046_v11 = vmul.f32 -1.442695, %v220_v3 }
 0x2f2   :  { %1096 = vpow2.f32 %v1047_v6 }
 0x2f5   :  { %v1093_v4 = vpop.eup %1092 }
 0x2f6   :  { %274 = vrot.lane.b32.xlu2 %v1093_v4, %s1261_s0 }
 0x2f7   :  { %v1095_v5 = vpop.eup %1094 }
 0x2f8   :  { %272 = vrot.lane.b32.xlu1 %v1095_v5, %s1261_s0  ;;  %v1097_v7 = vpop.eup %1096 }
 0x2f9   :  { %v229_v8 = vadd.f32 1.0, %v1097_v7 }
 0x2fb   :  { %1098 = vrcp.f32 %v229_v8  ;;  %v256_v18 = vand.u32 2147483648, %v229_v8  ;;  %vm250_vm12 = vweird.f32 %v229_v8  ;;  %v254_v20 = vand.u32 2147483647, %v229_v8 }
 0x2fc   :  { %1100 = vpow2.f32 %v1046_v11 }
 0x2fd   :  { %v257_v22 = vor.u32 1.1754944e-38, %v256_v18  ;;  %vm255_vm14 = vcmp.eq.f32.partialorder %v254_v20, 8.507059e+37 }
 0x301   :  { %v1099_v9 = vpop.eup %1098 }
 0x302   :  { %v246_v10 = vmul.f32 %v1099_v9, %v229_v8  ;;  %v1101_v16 = vpop.eup %1100  ;;  %vm251_vm11 = vweird.f32 %v1099_v9 }
 0x303   :  { %v228_v19 = vadd.f32 1.0, %v1101_v16  ;;  %vm252_vm13 = vmor %vm250_vm12, %vm251_vm11 }
 0x304   :  { %v247_v12 = vsub.f32 1.0, %v246_v10 }
 0x305   :  { %1102 = vrcp.f32 %v228_v19  ;;  %v241_v31 = vand.u32 2147483648, %v228_v19  ;;  %vm235_vm0 = vweird.f32 %v228_v19  ;;  %v239_v32 = vand.u32 2147483647, %v228_v19 }
 0x306   :  { %v248_v14 = vmul.f32 %v1099_v9, %v247_v12 }
 0x307   :  { %v242_v34 = vor.u32 1.1754944e-38, %v241_v31  ;;  %vm240_vm2 = vcmp.eq.f32.partialorder %v239_v32, 8.507059e+37 }
 0x308   :  { %v249_v17 = vadd.f32 %v1099_v9, %v248_v14 }
 0x30a   :  { %v253_v21 = vsel %vm252_vm13, %v1099_v9, %v249_v17 }
 0x30b   :  { %v258_v24 = vsel %vm255_vm14, %v257_v22, %v253_v21  ;;  %v1103_v26 = vpop.eup %1102 }
 0x30c   :  { %v231_v27 = vmul.f32 %v1103_v26, %v228_v19  ;;  %vm236_vm15 = vweird.f32 %v1103_v26  ;;  %v269_v39 = vmul.f32 %v265_v38, %v258_v24 }
 0x30d   :  { %vm237_vm1 = vmor %vm235_vm0, %vm236_vm15 }
 0x30e   :  { %v232_v28 = vsub.f32 1.0, %v231_v27 }
 0x310   :  { %v233_v29 = vmul.f32 %v1103_v26, %v232_v28 }
 0x312   :  { %v234_v30 = vadd.f32 %v1103_v26, %v233_v29 }
 0x314   :  { %v238_v33 = vsel %vm237_vm1, %v1103_v26, %v234_v30 }
 0x315   :  { %v243_v36 = vsel %vm240_vm2, %v242_v34, %v238_v33 }
 0x316   :  { %v268_v44 = vmul.f32 %v264_v43, %v243_v36 }
 0x350   :  { %v275_v23 = vpop.permute.xlu2 %274 }
 0x351   :  { %v279_v25 = vmul.f32 %v275_v23, %v258_v24 }
 0x353   :  { %284 = vrot.lane.b32.xlu1 %v279_v25, %s1262_s1 }
 0x36a   :  { %v273_v35 = vpop.permute.xlu1 %272 }
 0x36b   :  { %v278_v37 = vmul.f32 %v273_v35, %v243_v36 }
 0x36d   :  { %282 = vrot.lane.b32.xlu0 %v278_v37, %s1262_s1 }
 0x3c5   :  { %v285_v40 = vpop.permute.xlu1 %284 }
 0x3c6   :  { %v1315_v41 = vadd.f32 %v285_v40, %v269_v39 }
 0x3c8   :  { %1104 = vtanh.f32 %v1315_v41  ;;  %v380_v31 = vrot.slane %v1315_v41, 7 }
 0x3ce   :  { %v1105_v42 = vpop.eup %1104 }
 0x3cf   :  { %296 = vrot.lane.b32.xlu0 %v1105_v42, %s1261_s0 }
 0x3df   :  { %v283_v45 = vpop.permute.xlu0 %282 }
 0x3e0   :  { %v1320_v46 = vadd.f32 %v283_v45, %v268_v44 }
 0x3e2   :  { %1106 = vtanh.f32 %v1320_v46  ;;  %v379_v30 = vrot.slane %v1320_v46, 7 }
 0x3e8   :  { %v1107_v47 = vpop.eup %1106 }
 0x3e9   :  { %294 = vrot.lane.b32.xlu2 %v1107_v47, %s1261_s0 }
 0x441   :  { %v297_v48 = vpop.permute.xlu0 %296 }
 0x442   :  { %v301_v51 = vmul.f32 %v297_v48, %v258_v24 }
 0x443   :  { %v295_v49 = vpop.permute.xlu2 %294 }
 0x444   :  { %v300_v50 = vmul.f32 %v295_v49, %v243_v36 }
 0x446   :  { %v304_v52 = vrot.slane %v300_v50, 1 }
 0x448   :  { %v305_v53 = vsel %vm190_vm9, %v301_v51, %v304_v52 }
 0x449   :  { %306 = vrot.lane.b32.xlu1 %v305_v53, %s1262_s1 }
 0x4bb   :  { %v307_v54 = vpop.permute.xlu1 %306 }
 0x4bc   :  { %1048 = vmatmul.msk.f32.vlgmr.msra.gmra.mxu3 %vm83_vm10, %v307_v54 }
 0x53f   :  { %v327_v55 = vpop.f32.mrf.mxu3 }
 0x540   :  { %v331_v56 = vrot.slane %v327_v55, 6  ;;  %v332_v57 = vrot.slane %v327_v55, 7 }
 0x542   :  { %v335_v58 = vadd.f32 %v331_v56, %v1290_v15  ;;  %v336_v59 = vadd.f32 %v332_v57, %v1287_v13 }
 0x544   :  { %1108 = vtanh.f32 %v335_v58  ;;  %v1049_v62 = vmul.f32 -1.442695, %v335_v58  ;;  %v1050_v2 = vmul.f32 -1.442695, %v336_v59 }
 0x545   :  { %1110 = vtanh.f32 %v336_v59 }
 0x546   :  { %1112 = vpow2.f32 %v1049_v62 }
 0x54a   :  { %v1109_v60 = vpop.eup %1108 }
 0x54b   :  { %v1111_v61 = vpop.eup %1110  ;;  %387 = vrot.lane.b32.xlu2 %v1109_v60, %s1261_s0 }
 0x54c   :  { %389 = vrot.lane.b32.xlu0 %v1111_v61, %s1261_s0  ;;  %v1113_v63 = vpop.eup %1112 }
 0x54d   :  { %v343_v0 = vadd.f32 1.0, %v1113_v63 }
 0x54f   :  { %1114 = vrcp.f32 %v343_v0  ;;  %v356_v9 = vand.u32 2147483648, %v343_v0  ;;  %vm350_vm4 = vweird.f32 %v343_v0  ;;  %v354_v10 = vand.u32 2147483647, %v343_v0 }
 0x550   :  { %1116 = vpow2.f32 %v1050_v2 }
 0x551   :  { %v357_v12 = vor.u32 1.1754944e-38, %v356_v9  ;;  %vm355_vm6 = vcmp.eq.f32.partialorder %v354_v10, 8.507059e+37 }
 0x555   :  { %v1115_v1 = vpop.eup %1114 }
 0x556   :  { %v346_v3 = vmul.f32 %v1115_v1, %v343_v0  ;;  %v1117_v6 = vpop.eup %1116  ;;  %vm351_vm3 = vweird.f32 %v1115_v1 }
 0x557   :  { %v344_v7 = vadd.f32 1.0, %v1117_v6  ;;  %vm352_vm5 = vmor %vm350_vm4, %vm351_vm3 }
 0x558   :  { %v347_v4 = vsub.f32 1.0, %v346_v3 }
 0x559   :  { %1118 = vrcp.f32 %v344_v7  ;;  %v371_v23 = vand.u32 2147483648, %v344_v7  ;;  %vm365_vm8 = vweird.f32 %v344_v7  ;;  %v369_v24 = vand.u32 2147483647, %v344_v7 }
 0x55a   :  { %v348_v5 = vmul.f32 %v1115_v1, %v347_v4 }
 0x55b   :  { %v372_v26 = vor.u32 1.1754944e-38, %v371_v23  ;;  %vm370_vm12 = vcmp.eq.f32.partialorder %v369_v24, 8.507059e+37 }
 0x55c   :  { %v349_v8 = vadd.f32 %v1115_v1, %v348_v5 }
 0x55e   :  { %v353_v11 = vsel %vm352_vm5, %v1115_v1, %v349_v8 }
 0x55f   :  { %v358_v16 = vsel %vm355_vm6, %v357_v12, %v353_v11  ;;  %v1119_v18 = vpop.eup %1118 }
 0x560   :  { %v361_v19 = vmul.f32 %v1119_v18, %v344_v7  ;;  %vm366_vm7 = vweird.f32 %v1119_v18  ;;  %v383_v32 = vmul.f32 %v379_v30, %v358_v16 }
 0x561   :  { %vm367_vm11 = vmor %vm365_vm8, %vm366_vm7 }
 0x562   :  { %v362_v20 = vsub.f32 1.0, %v361_v19 }
 0x564   :  { %v363_v21 = vmul.f32 %v1119_v18, %v362_v20 }
 0x566   :  { %v364_v22 = vadd.f32 %v1119_v18, %v363_v21 }
 0x568   :  { %v368_v25 = vsel %vm367_vm11, %v1119_v18, %v364_v22 }
 0x569   :  { %v373_v28 = vsel %vm370_vm12, %v372_v26, %v368_v25 }
 0x56a   :  { %v384_v33 = vmul.f32 %v380_v31, %v373_v28 }
 0x5a5   :  { %v388_v14 = vpop.permute.xlu2 %387 }
 0x5a6   :  { %v393_v17 = vmul.f32 %v388_v14, %v358_v16 }
 0x5a8   :  { %397 = vrot.lane.b32.xlu1 %v393_v17, %s1262_s1 }
 0x5be   :  { %v390_v27 = vpop.permute.xlu0 %389 }
 0x5bf   :  { %v394_v29 = vmul.f32 %v390_v27, %v373_v28 }
 0x5c1   :  { %399 = vrot.lane.b32.xlu2 %v394_v29, %s1262_s1 }
 0x61a   :  { %v398_v34 = vpop.permute.xlu1 %397 }
 0x61b   :  { %v400_v35 = vpop.permute.xlu2 %399  ;;  %v1335_v36 = vadd.f32 %v398_v34, %v383_v32 }
 0x61c   :  { %v1337_v37 = vadd.f32 %v400_v35, %v384_v33 }
 0x61d   :  { %1120 = vtanh.f32 %v1335_v36  ;;  %v495_v23 = vrot.slane %v1335_v36, 7 }
 0x61e   :  { %1122 = vtanh.f32 %v1337_v37 }
 0x623   :  { %v1121_v38 = vpop.eup %1120 }
 0x624   :  { %v1123_v39 = vpop.eup %1122  ;;  %409 = vrot.lane.b32.xlu0 %v1121_v38, %s1261_s0 }
 0x625   :  { %411 = vrot.lane.b32.xlu1 %v1123_v39, %s1261_s0 }
 0x696   :  { %v410_v40 = vpop.permute.xlu0 %409 }
 0x697   :  { %v412_v41 = vpop.permute.xlu1 %411  ;;  %v415_v42 = vmul.f32 %v410_v40, %v358_v16 }
 0x698   :  { %v416_v43 = vmul.f32 %v412_v41, %v373_v28  ;;  %v496_v28 = vrot.slane %v1337_v37, 7 }
 0x699   :  { %v419_v44 = vrot.slane %v415_v42, 2 }
 0x69a   :  { %v420_v45 = vrot.slane %v416_v43, 1 }
 0x69c   :  { %v421_v46 = vsel %vm190_vm9, %v420_v45, %v419_v44 }
 0x69d   :  { %422 = vrot.lane.b32.xlu2 %v421_v46, %s1262_s1 }
 0x6f7   :  { %v423_v47 = vpop.permute.xlu2 %422 }
 0x6f8   :  { %1051 = vmatmul.msk.f32.vlgmr.msrb.gmra.mxu1 %vm83_vm10, %v423_v47 }
 0x775   :  { %v443_v48 = vpop.f32.mrf.mxu1 }
 0x776   :  { %v447_v49 = vrot.slane %v443_v48, 5  ;;  %v448_v50 = vrot.slane %v443_v48, 6 }
 0x778   :  { %v451_v51 = vadd.f32 %v447_v49, %v1290_v15  ;;  %v452_v52 = vadd.f32 %v448_v50, %v1287_v13 }
 0x77a   :  { %1124 = vtanh.f32 %v451_v51  ;;  %v1052_v55 = vmul.f32 -1.442695, %v451_v51  ;;  %v1053_v56 = vmul.f32 -1.442695, %v452_v52 }
 0x77b   :  { %1126 = vtanh.f32 %v452_v52 }
 0x77c   :  { %1128 = vpow2.f32 %v1052_v55 }
 0x77d   :  { %1130 = vpow2.f32 %v1053_v56 }
 0x780   :  { %v1125_v53 = vpop.eup %1124 }
 0x781   :  { %v1127_v54 = vpop.eup %1126  ;;  %503 = vrot.lane.b32.xlu0 %v1125_v53, %s1261_s0 }
 0x782   :  { %505 = vrot.lane.b32.xlu1 %v1127_v54, %s1261_s0  ;;  %v1129_v57 = vpop.eup %1128 }
 0x783   :  { %v1131_v58 = vpop.eup %1130  ;;  %v459_v59 = vadd.f32 1.0, %v1129_v57 }
 0x784   :  { %v460_v60 = vadd.f32 1.0, %v1131_v58 }
 0x785   :  { %1132 = vrcp.f32 %v459_v59  ;;  %v472_v7 = vand.u32 2147483648, %v459_v59  ;;  %vm466_vm15 = vweird.f32 %v459_v59  ;;  %v470_v9 = vand.u32 2147483647, %v459_v59 }
 0x786   :  { %1134 = vrcp.f32 %v460_v60  ;;  %v487_v8 = vand.u32 2147483648, %v460_v60  ;;  %vm481_vm0 = vweird.f32 %v460_v60  ;;  %v485_v10 = vand.u32 2147483647, %v460_v60 }
 0x787   :  { %v473_v14 = vor.u32 1.1754944e-38, %v472_v7  ;;  %vm471_vm3 = vcmp.eq.f32.partialorder %v470_v9, 8.507059e+37 }
 0x788   :  { %v488_v16 = vor.u32 1.1754944e-38, %v487_v8  ;;  %vm486_vm4 = vcmp.eq.f32.partialorder %v485_v10, 8.507059e+37 }
 0x78b   :  { %v1133_v61 = vpop.eup %1132 }
 0x78c   :  { %v1135_v62 = vpop.eup %1134  ;;  %v462_v63 = vmul.f32 %v1133_v61, %v459_v59  ;;  %vm467_vm13 = vweird.f32 %v1133_v61 }
 0x78d   :  { %v477_v0 = vmul.f32 %v1135_v62, %v460_v60  ;;  %vm482_vm14 = vweird.f32 %v1135_v62  ;;  %vm468_vm1 = vmor %vm466_vm15, %vm467_vm13 }
 0x78e   :  { %v463_v1 = vsub.f32 1.0, %v462_v63  ;;  %vm483_vm2 = vmor %vm481_vm0, %vm482_vm14 }
 0x78f   :  { %v478_v2 = vsub.f32 1.0, %v477_v0 }
 0x790   :  { %v464_v3 = vmul.f32 %v1133_v61, %v463_v1 }
 0x791   :  { %v479_v4 = vmul.f32 %v1135_v62, %v478_v2 }
 0x792   :  { %v465_v5 = vadd.f32 %v1133_v61, %v464_v3 }
 0x793   :  { %v480_v6 = vadd.f32 %v1135_v62, %v479_v4 }
 0x794   :  { %v469_v11 = vsel %vm468_vm1, %v1133_v61, %v465_v5 }
 0x795   :  { %v484_v12 = vsel %vm483_vm2, %v1135_v62, %v480_v6  ;;  %v474_v18 = vsel %vm471_vm3, %v473_v14, %v469_v11 }
 0x796   :  { %v489_v20 = vsel %vm486_vm4, %v488_v16, %v484_v12  ;;  %v499_v24 = vmul.f32 %v495_v23, %v474_v18 }
 0x797   :  { %v500_v29 = vmul.f32 %v496_v28, %v489_v20 }
 0x7f3   :  { %v504_v17 = vpop.permute.xlu0 %503 }
 0x7f4   :  { %v506_v19 = vpop.permute.xlu1 %505  ;;  %v509_v21 = vmul.f32 %v504_v17, %v474_v18 }
 0x7f5   :  { %v510_v22 = vmul.f32 %v506_v19, %v489_v20 }
 0x7f6   :  { %513 = vrot.lane.b32.xlu2 %v509_v21, %s1262_s1 }
 0x7f7   :  { %515 = vrot.lane.b32.xlu0 %v510_v22, %s1262_s1 }
 0x850   :  { %v514_v25 = vpop.permute.xlu2 %513 }
 0x851   :  { %v1353_v26 = vadd.f32 %v514_v25, %v499_v24 }
 0x853   :  { %1136 = vtanh.f32 %v1353_v26  ;;  %v611_v21 = vrot.slane %v1353_v26, 7 }
 0x859   :  { %v1137_v27 = vpop.eup %1136 }
 0x85a   :  { %525 = vrot.lane.b32.xlu1 %v1137_v27, %s1261_s0 }
 0x869   :  { %v516_v30 = vpop.permute.xlu0 %515 }
 0x86a   :  { %v1358_v31 = vadd.f32 %v516_v30, %v500_v29 }
 0x86c   :  { %1138 = vtanh.f32 %v1358_v31  ;;  %v612_v16 = vrot.slane %v1358_v31, 7 }
 0x872   :  { %v1139_v32 = vpop.eup %1138 }
 0x873   :  { %527 = vrot.lane.b32.xlu2 %v1139_v32, %s1261_s0 }
 0x8cc   :  { %v526_v33 = vpop.permute.xlu1 %525 }
 0x8cd   :  { %v528_v34 = vpop.permute.xlu2 %527  ;;  %v531_v35 = vmul.f32 %v526_v33, %v474_v18 }
 0x8ce   :  { %v532_v36 = vmul.f32 %v528_v34, %v489_v20 }
 0x8cf   :  { %v535_v38 = vrot.slane %v531_v35, 3 }
 0x8d0   :  { %v536_v39 = vrot.slane %v532_v36, 2 }
 0x8d2   :  { %v537_v40 = vsel %vm190_vm9, %v536_v39, %v535_v38 }
 0x8d3   :  { %538 = vrot.lane.b32.xlu0 %v537_v40, %s1262_s1 }
 0x945   :  { %v539_v37 = vpop.permute.xlu0 %538 }
 0x946   :  { %1054 = vmatmul.msk.f32.vlgmr.msrb.gmra.mxu2 %vm83_vm10, %v539_v37 }
 0x9c9   :  { %v559_v41 = vpop.f32.mrf.mxu2 }
 0x9ca   :  { %v563_v42 = vrot.slane %v559_v41, 4  ;;  %v564_v43 = vrot.slane %v559_v41, 5 }
 0x9cc   :  { %v567_v44 = vadd.f32 %v563_v42, %v1290_v15  ;;  %v568_v45 = vadd.f32 %v564_v43, %v1287_v13 }
 0x9ce   :  { %1140 = vtanh.f32 %v567_v44  ;;  %v1056_v48 = vmul.f32 -1.442695, %v568_v45  ;;  %v1055_v52 = vmul.f32 -1.442695, %v567_v44 }
 0x9cf   :  { %1142 = vtanh.f32 %v568_v45 }
 0x9d0   :  { %1144 = vpow2.f32 %v1056_v48 }
 0x9d4   :  { %v1141_v46 = vpop.eup %1140 }
 0x9d5   :  { %v1143_v47 = vpop.eup %1142  ;;  %619 = vrot.lane.b32.xlu1 %v1141_v46, %s1261_s0 }
 0x9d6   :  { %621 = vrot.lane.b32.xlu2 %v1143_v47, %s1261_s0  ;;  %v1145_v49 = vpop.eup %1144 }
 0x9d7   :  { %v576_v50 = vadd.f32 1.0, %v1145_v49 }
 0x9d9   :  { %1146 = vrcp.f32 %v576_v50  ;;  %v603_v59 = vand.u32 2147483648, %v576_v50  ;;  %vm597_vm6 = vweird.f32 %v576_v50  ;;  %v601_v60 = vand.u32 2147483647, %v576_v50 }
 0x9da   :  { %1148 = vpow2.f32 %v1055_v52 }
 0x9db   :  { %v604_v62 = vor.u32 1.1754944e-38, %v603_v59  ;;  %vm602_vm8 = vcmp.eq.f32.partialorder %v601_v60, 8.507059e+37 }
 0x9df   :  { %v1147_v51 = vpop.eup %1146 }
 0x9e0   :  { %v593_v53 = vmul.f32 %v1147_v51, %v576_v50  ;;  %v1149_v55 = vpop.eup %1148  ;;  %vm598_vm5 = vweird.f32 %v1147_v51 }
 0x9e1   :  { %v575_v57 = vadd.f32 1.0, %v1149_v55  ;;  %vm599_vm7 = vmor %vm597_vm6, %vm598_vm5 }
 0x9e2   :  { %v594_v54 = vsub.f32 1.0, %v593_v53 }
 0x9e3   :  { %1150 = vrcp.f32 %v575_v57  ;;  %v588_v7 = vand.u32 2147483648, %v575_v57  ;;  %vm582_vm12 = vweird.f32 %v575_v57  ;;  %v586_v8 = vand.u32 2147483647, %v575_v57 }
 0x9e4   :  { %v595_v56 = vmul.f32 %v1147_v51, %v594_v54 }
 0x9e5   :  { %v589_v10 = vor.u32 1.1754944e-38, %v588_v7  ;;  %vm587_vm14 = vcmp.eq.f32.partialorder %v586_v8, 8.507059e+37 }
 0x9e6   :  { %v596_v58 = vadd.f32 %v1147_v51, %v595_v56 }
 0x9e8   :  { %v600_v61 = vsel %vm599_vm7, %v1147_v51, %v596_v58 }
 0x9e9   :  { %v605_v0 = vsel %vm602_vm8, %v604_v62, %v600_v61  ;;  %v1151_v1 = vpop.eup %1150 }
 0x9ea   :  { %v578_v3 = vmul.f32 %v1151_v1, %v575_v57  ;;  %vm583_vm11 = vweird.f32 %v1151_v1  ;;  %v616_v17 = vmul.f32 %v612_v16, %v605_v0 }
 0x9eb   :  { %vm584_vm13 = vmor %vm582_vm12, %vm583_vm11 }
 0x9ec   :  { %v579_v4 = vsub.f32 1.0, %v578_v3 }
 0x9ee   :  { %v580_v5 = vmul.f32 %v1151_v1, %v579_v4 }
 0x9f0   :  { %v581_v6 = vadd.f32 %v1151_v1, %v580_v5 }
 0x9f2   :  { %v585_v9 = vsel %vm584_vm13, %v1151_v1, %v581_v6 }
 0x9f3   :  { %v590_v12 = vsel %vm587_vm14, %v589_v10, %v585_v9 }
 0x9f4   :  { %v615_v22 = vmul.f32 %v611_v21, %v590_v12 }
 0xa30   :  { %v622_v63 = vpop.permute.xlu2 %621 }
 0xa31   :  { %v626_v2 = vmul.f32 %v622_v63, %v605_v0 }
 0xa33   :  { %631 = vrot.lane.b32.xlu1 %v626_v2, %s1262_s1 }
 0xa47   :  { %v620_v11 = vpop.permute.xlu1 %619 }
 0xa48   :  { %v625_v14 = vmul.f32 %v620_v11, %v590_v12 }
 0xa4a   :  { %629 = vrot.lane.b32.xlu0 %v625_v14, %s1262_s1 }
 0xaa5   :  { %v632_v18 = vpop.permute.xlu1 %631 }
 0xaa6   :  { %v1372_v19 = vadd.f32 %v632_v18, %v616_v17 }
 0xaa8   :  { %1152 = vtanh.f32 %v1372_v19  ;;  %v728_v8 = vrot.slane %v1372_v19, 7 }
 0xaae   :  { %v1153_v20 = vpop.eup %1152 }
 0xaaf   :  { %643 = vrot.lane.b32.xlu0 %v1153_v20, %s1261_s0 }
 0xabc   :  { %v630_v23 = vpop.permute.xlu0 %629 }
 0xabd   :  { %v1377_v24 = vadd.f32 %v630_v23, %v615_v22 }
 0xabf   :  { %1154 = vtanh.f32 %v1377_v24  ;;  %v727_v7 = vrot.slane %v1377_v24, 7 }
 0xac5   :  { %v1155_v25 = vpop.eup %1154 }
 0xac6   :  { %641 = vrot.lane.b32.xlu2 %v1155_v25, %s1261_s0 }
 0xb20   :  { %v642_v27 = vpop.permute.xlu2 %641 }
 0xb21   :  { %v644_v28 = vpop.permute.xlu0 %643  ;;  %v647_v29 = vmul.f32 %v642_v27, %v590_v12 }
 0xb22   :  { %v648_v30 = vmul.f32 %v644_v28, %v605_v0 }
 0xb23   :  { %v651_v31 = vrot.slane %v647_v29, 4 }
 0xb24   :  { %v652_v32 = vrot.slane %v648_v30, 3 }
 0xb26   :  { %v653_v33 = vsel %vm190_vm9, %v652_v32, %v651_v31 }
 0xb27   :  { %654 = vrot.lane.b32.xlu1 %v653_v33, %s1262_s1 }
 0xb99   :  { %v655_v26 = vpop.permute.xlu1 %654 }
 0xb9a   :  { %1057 = vmatmul.msk.f32.vlgmr.msrb.gmra.mxu3 %vm83_vm10, %v655_v26 }
 0xc1d   :  { %v675_v34 = vpop.f32.mrf.mxu3 }
 0xc1e   :  { %v679_v35 = vrot.slane %v675_v34, 3  ;;  %v680_v36 = vrot.slane %v675_v34, 4 }
 0xc20   :  { %v683_v38 = vadd.f32 %v679_v35, %v1290_v15  ;;  %v684_v39 = vadd.f32 %v680_v36, %v1287_v13 }
 0xc22   :  { %1156 = vtanh.f32 %v683_v38  ;;  %v1058_v41 = vmul.f32 -1.442695, %v683_v38  ;;  %v1059_v45 = vmul.f32 -1.442695, %v684_v39 }
 0xc23   :  { %1158 = vtanh.f32 %v684_v39 }
 0xc24   :  { %1160 = vpow2.f32 %v1058_v41 }
 0xc28   :  { %v1157_v40 = vpop.eup %1156 }
 0xc29   :  { %v1159_v37 = vpop.eup %1158  ;;  %735 = vrot.lane.b32.xlu2 %v1157_v40, %s1261_s0 }
 0xc2a   :  { %737 = vrot.lane.b32.xlu0 %v1159_v37, %s1261_s0  ;;  %v1161_v42 = vpop.eup %1160 }
 0xc2b   :  { %v691_v43 = vadd.f32 1.0, %v1161_v42 }
 0xc2d   :  { %1162 = vrcp.f32 %v691_v43  ;;  %v704_v52 = vand.u32 2147483648, %v691_v43  ;;  %vm698_vm0 = vweird.f32 %v691_v43  ;;  %v702_v53 = vand.u32 2147483647, %v691_v43 }
 0xc2e   :  { %1164 = vpow2.f32 %v1059_v45 }
 0xc2f   :  { %v705_v55 = vor.u32 1.1754944e-38, %v704_v52  ;;  %vm703_vm2 = vcmp.eq.f32.partialorder %v702_v53, 8.507059e+37 }
 0xc33   :  { %v1163_v44 = vpop.eup %1162 }
 0xc34   :  { %v694_v46 = vmul.f32 %v1163_v44, %v691_v43  ;;  %v1165_v49 = vpop.eup %1164  ;;  %vm699_vm15 = vweird.f32 %v1163_v44 }
 0xc35   :  { %v692_v50 = vadd.f32 1.0, %v1165_v49  ;;  %vm700_vm1 = vmor %vm698_vm0, %vm699_vm15 }
 0xc36   :  { %v695_v47 = vsub.f32 1.0, %v694_v46 }
 0xc37   :  { %1166 = vrcp.f32 %v692_v50  ;;  %v719_v0 = vand.u32 2147483648, %v692_v50  ;;  %vm713_vm4 = vweird.f32 %v692_v50  ;;  %v717_v1 = vand.u32 2147483647, %v692_v50 }
 0xc38   :  { %v696_v48 = vmul.f32 %v1163_v44, %v695_v47 }
 0xc39   :  { %v720_v3 = vor.u32 1.1754944e-38, %v719_v0  ;;  %vm718_vm6 = vcmp.eq.f32.partialorder %v717_v1, 8.507059e+37 }
 0xc3a   :  { %v697_v51 = vadd.f32 %v1163_v44, %v696_v48 }
 0xc3c   :  { %v701_v54 = vsel %vm700_vm1, %v1163_v44, %v697_v51 }
 0xc3d   :  { %v706_v57 = vsel %vm703_vm2, %v705_v55, %v701_v54  ;;  %v1167_v59 = vpop.eup %1166 }
 0xc3e   :  { %v709_v60 = vmul.f32 %v1167_v59, %v692_v50  ;;  %vm714_vm3 = vweird.f32 %v1167_v59  ;;  %v731_v9 = vmul.f32 %v727_v7, %v706_v57 }
 0xc3f   :  { %vm715_vm5 = vmor %vm713_vm4, %vm714_vm3 }
 0xc40   :  { %v710_v61 = vsub.f32 1.0, %v709_v60 }
 0xc42   :  { %v711_v62 = vmul.f32 %v1167_v59, %v710_v61 }
 0xc44   :  { %v712_v63 = vadd.f32 %v1167_v59, %v711_v62 }
 0xc46   :  { %v716_v2 = vsel %vm715_vm5, %v1167_v59, %v712_v63 }
 0xc47   :  { %v721_v5 = vsel %vm718_vm6, %v720_v3, %v716_v2 }
 0xc48   :  { %v732_v10 = vmul.f32 %v728_v8, %v721_v5 }
 0xc83   :  { %v736_v56 = vpop.permute.xlu2 %735 }
 0xc84   :  { %v741_v58 = vmul.f32 %v736_v56, %v706_v57 }
 0xc86   :  { %745 = vrot.lane.b32.xlu1 %v741_v58, %s1262_s1 }
 0xc9c   :  { %v738_v4 = vpop.permute.xlu0 %737 }
 0xc9d   :  { %v742_v6 = vmul.f32 %v738_v4, %v721_v5 }
 0xc9f   :  { %747 = vrot.lane.b32.xlu2 %v742_v6, %s1262_s1 }
 0xcf8   :  { %v746_v11 = vpop.permute.xlu1 %745 }
 0xcf9   :  { %v748_v12 = vpop.permute.xlu2 %747  ;;  %v1392_v14 = vadd.f32 %v746_v11, %v731_v9 }
 0xcfa   :  { %v1394_v16 = vadd.f32 %v748_v12, %v732_v10 }
 0xcfb   :  { %1168 = vtanh.f32 %v1392_v14  ;;  %v843_v0 = vrot.slane %v1392_v14, 7 }
 0xcfc   :  { %1170 = vtanh.f32 %v1394_v16 }
 0xd01   :  { %v1169_v17 = vpop.eup %1168 }
 0xd02   :  { %v1171_v18 = vpop.eup %1170  ;;  %757 = vrot.lane.b32.xlu0 %v1169_v17, %s1261_s0 }
 0xd03   :  { %759 = vrot.lane.b32.xlu1 %v1171_v18, %s1261_s0 }
 0xd74   :  { %v758_v20 = vpop.permute.xlu0 %757 }
 0xd75   :  { %v760_v19 = vpop.permute.xlu1 %759  ;;  %v763_v21 = vmul.f32 %v758_v20, %v706_v57 }
 0xd76   :  { %v764_v22 = vmul.f32 %v760_v19, %v721_v5  ;;  %v844_v5 = vrot.slane %v1394_v16, 7 }
 0xd77   :  { %v767_v23 = vrot.slane %v763_v21, 5 }
 0xd78   :  { %v768_v24 = vrot.slane %v764_v22, 4 }
 0xd7a   :  { %v769_v25 = vsel %vm190_vm9, %v768_v24, %v767_v23 }
 0xd7b   :  { %770 = vrot.lane.b32.xlu2 %v769_v25, %s1262_s1 }
 0xdd5   :  { %v771_v27 = vpop.permute.xlu2 %770 }
 0xdd6   :  { %1060 = vmatmul.msk.f32.vlgmr.msrb.gmra.mxu0 %vm83_vm10, %v771_v27 }
 0xe53   :  { %v791_v28 = vpop.f32.mrf.mxu0 }
 0xe54   :  { %v795_v29 = vrot.slane %v791_v28, 2  ;;  %v796_v30 = vrot.slane %v791_v28, 3 }
 0xe56   :  { %v799_v31 = vadd.f32 %v795_v29, %v1290_v15  ;;  %v800_v32 = vadd.f32 %v796_v30, %v1287_v13 }
 0xe58   :  { %1172 = vtanh.f32 %v799_v31  ;;  %v1061_v34 = vmul.f32 -1.442695, %v799_v31  ;;  %v1062_v35 = vmul.f32 -1.442695, %v800_v32 }
 0xe59   :  { %1174 = vtanh.f32 %v800_v32 }
 0xe5a   :  { %1176 = vpow2.f32 %v1061_v34 }
 0xe5b   :  { %1178 = vpow2.f32 %v1062_v35 }
 0xe5e   :  { %v1173_v33 = vpop.eup %1172 }
 0xe5f   :  { %v1175_v26 = vpop.eup %1174  ;;  %851 = vrot.lane.b32.xlu0 %v1173_v33, %s1261_s0 }
 0xe60   :  { %853 = vrot.lane.b32.xlu1 %v1175_v26, %s1261_s0  ;;  %v1177_v36 = vpop.eup %1176 }
 0xe61   :  { %v1179_v38 = vpop.eup %1178  ;;  %v807_v39 = vadd.f32 1.0, %v1177_v36 }
 0xe62   :  { %v808_v40 = vadd.f32 1.0, %v1179_v38 }
 0xe63   :  { %1180 = vrcp.f32 %v807_v39  ;;  %v820_v50 = vand.u32 2147483648, %v807_v39  ;;  %vm814_vm11 = vweird.f32 %v807_v39  ;;  %v818_v52 = vand.u32 2147483647, %v807_v39 }
 0xe64   :  { %1182 = vrcp.f32 %v808_v40  ;;  %v835_v51 = vand.u32 2147483648, %v808_v40  ;;  %vm829_vm12 = vweird.f32 %v808_v40  ;;  %v833_v53 = vand.u32 2147483647, %v808_v40 }
 0xe65   :  { %v821_v56 = vor.u32 1.1754944e-38, %v820_v50  ;;  %vm819_vm15 = vcmp.eq.f32.partialorder %v818_v52, 8.507059e+37 }
 0xe66   :  { %v836_v57 = vor.u32 1.1754944e-38, %v835_v51  ;;  %vm834_vm0 = vcmp.eq.f32.partialorder %v833_v53, 8.507059e+37 }
 0xe69   :  { %v1181_v37 = vpop.eup %1180 }
 0xe6a   :  { %v1183_v41 = vpop.eup %1182  ;;  %v810_v42 = vmul.f32 %v1181_v37, %v807_v39  ;;  %vm815_vm7 = vweird.f32 %v1181_v37 }
 0xe6b   :  { %v825_v43 = vmul.f32 %v1183_v41, %v808_v40  ;;  %vm830_vm8 = vweird.f32 %v1183_v41  ;;  %vm816_vm13 = vmor %vm814_vm11, %vm815_vm7  ;;  %vm1013_vm7 = vcmask 261127   ;;  %vm1031_vm11 = vcmask 7175  }
 0xe6c   :  { %v811_v44 = vsub.f32 1.0, %v810_v42  ;;  %vm831_vm14 = vmor %vm829_vm12, %vm830_vm8  ;;  %vm1017_vm8 = vcmask 253952   ;;  %vm1033_vm12 = vcmask 0  }
 0xe6d   :  { %v826_v45 = vsub.f32 1.0, %v825_v43 }
 0xe6e   :  { %v812_v46 = vmul.f32 %v1181_v37, %v811_v44 }
 0xe6f   :  { %v827_v47 = vmul.f32 %v1183_v41, %v826_v45 }
 0xe70   :  { %v813_v48 = vadd.f32 %v1181_v37, %v812_v46 }
 0xe71   :  { %v828_v49 = vadd.f32 %v1183_v41, %v827_v47 }
 0xe72   :  { %v817_v54 = vsel %vm816_vm13, %v1181_v37, %v813_v48 }
 0xe73   :  { %v832_v55 = vsel %vm831_vm14, %v1183_v41, %v828_v49  ;;  %v822_v59 = vsel %vm819_vm15, %v821_v56, %v817_v54 }
 0xe74   :  { %v837_v61 = vsel %vm834_vm0, %v836_v57, %v832_v55  ;;  %v847_v1 = vmul.f32 %v843_v0, %v822_v59  ;;  %v1075_v55 = vld [vmem:[#allocation4 + $0x29] ss:$0 sm:$0xff] }
 0xe75   :  { %v848_v6 = vmul.f32 %v844_v5, %v837_v61 }
 0xed1   :  { %v852_v58 = vpop.permute.xlu0 %851 }
 0xed2   :  { %v854_v60 = vpop.permute.xlu1 %853  ;;  %v857_v62 = vmul.f32 %v852_v58, %v822_v59 }
 0xed3   :  { %v858_v63 = vmul.f32 %v854_v60, %v837_v61 }
 0xed4   :  { %861 = vrot.lane.b32.xlu2 %v857_v62, %s1262_s1 }
 0xed5   :  { %863 = vrot.lane.b32.xlu0 %v858_v63, %s1262_s1 }
 0xf2e   :  { %v862_v2 = vpop.permute.xlu2 %861 }
 0xf2f   :  { %v1410_v3 = vadd.f32 %v862_v2, %v847_v1 }
 0xf31   :  { %1184 = vtanh.f32 %v1410_v3  ;;  %v959_v56 = vrot.slane %v1410_v3, 7 }
 0xf37   :  { %v1185_v4 = vpop.eup %1184 }
 0xf38   :  { %873 = vrot.lane.b32.xlu1 %v1185_v4, %s1261_s0 }
 0xf47   :  { %v864_v7 = vpop.permute.xlu0 %863 }
 0xf48   :  { %v1415_v8 = vadd.f32 %v864_v7, %v848_v6 }
 0xf4a   :  { %1186 = vtanh.f32 %v1415_v8 }
 0xf50   :  { %v1187_v9 = vpop.eup %1186 }
 0xf51   :  { %875 = vrot.lane.b32.xlu2 %v1187_v9, %s1261_s0 }
 0xfaa   :  { %v874_v10 = vpop.permute.xlu1 %873 }
 0xfab   :  { %v876_v11 = vpop.permute.xlu2 %875  ;;  %v879_v12 = vmul.f32 %v874_v10, %v822_v59 }
 0xfac   :  { %v880_v14 = vmul.f32 %v876_v11, %v837_v61  ;;  %v960_v61 = vrot.slane %v1415_v8, 7 }
 0xfad   :  { %v883_v17 = vrot.slane %v879_v12, 6 }
 0xfae   :  { %v884_v18 = vrot.slane %v880_v14, 5 }
 0xfb0   :  { %v885_v20 = vsel %vm190_vm9, %v884_v18, %v883_v17 }
 0xfb1   :  { %886 = vrot.lane.b32.xlu0 %v885_v20, %s1262_s1 }
0x1023   :  { %v887_v16 = vpop.permute.xlu0 %886 }
0x1024   :  { %1063 = vmatmul.msk.f32.vlgmr.msra.gmra.mxu1 %vm83_vm10, %v887_v16 }
0x10a1   :  { %v907_v19 = vpop.f32.mrf.mxu1 }
0x10a2   :  { %v911_v21 = vrot.slane %v907_v19, 1  ;;  %v912_v22 = vrot.slane %v907_v19, 2 }
0x10a4   :  { %v915_v23 = vadd.f32 %v911_v21, %v1290_v15  ;;  %v916_v24 = vadd.f32 %v912_v22, %v1287_v13 }
0x10a6   :  { %1188 = vtanh.f32 %v915_v23  ;;  %v1064_v28 = vmul.f32 -1.442695, %v915_v23  ;;  %v1065_v32 = vmul.f32 -1.442695, %v916_v24 }
0x10a7   :  { %1190 = vtanh.f32 %v916_v24 }
0x10a8   :  { %1192 = vpow2.f32 %v1064_v28 }
0x10ac   :  { %v1189_v25 = vpop.eup %1188 }
0x10ad   :  { %v1191_v27 = vpop.eup %1190  ;;  %967 = vrot.lane.b32.xlu2 %v1189_v25, %s1261_s0 }
0x10ae   :  { %969 = vrot.lane.b32.xlu1 %v1191_v27, %s1261_s0  ;;  %v1193_v29 = vpop.eup %1192 }
0x10af   :  { %v923_v30 = vadd.f32 1.0, %v1193_v29 }
0x10b1   :  { %1194 = vrcp.f32 %v923_v30  ;;  %v936_v36 = vand.u32 2147483648, %v923_v30  ;;  %vm930_vm10 = vweird.f32 %v923_v30  ;;  %v934_v38 = vand.u32 2147483647, %v923_v30 }
0x10b2   :  { %1196 = vpow2.f32 %v1065_v32 }
0x10b3   :  { %v937_v40 = vor.u32 1.1754944e-38, %v936_v36  ;;  %vm935_vm2 = vcmp.eq.f32.partialorder %v934_v38, 8.507059e+37 }
0x10b7   :  { %v1195_v31 = vpop.eup %1194 }
0x10b8   :  { %v926_v33 = vmul.f32 %v1195_v31, %v923_v30  ;;  %v1197_v13 = vpop.eup %1196  ;;  %vm931_vm9 = vweird.f32 %v1195_v31 }
0x10b9   :  { %v924_v34 = vadd.f32 1.0, %v1197_v13  ;;  %vm932_vm1 = vmor %vm930_vm10, %vm931_vm9 }
0x10ba   :  { %v927_v15 = vsub.f32 1.0, %v926_v33 }
0x10bb   :  { %1198 = vrcp.f32 %v924_v34  ;;  %v951_v48 = vand.u32 2147483648, %v924_v34  ;;  %vm945_vm4 = vweird.f32 %v924_v34  ;;  %v949_v49 = vand.u32 2147483647, %v924_v34 }
0x10bc   :  { %v928_v26 = vmul.f32 %v1195_v31, %v927_v15 }
0x10bd   :  { %v952_v51 = vor.u32 1.1754944e-38, %v951_v48  ;;  %vm950_vm6 = vcmp.eq.f32.partialorder %v949_v49, 8.507059e+37 }
0x10be   :  { %v929_v35 = vadd.f32 %v1195_v31, %v928_v26 }
0x10c0   :  { %v933_v39 = vsel %vm932_vm1, %v1195_v31, %v929_v35 }
0x10c1   :  { %v938_v41 = vsel %vm935_vm2, %v937_v40, %v933_v39  ;;  %v1199_v43 = vpop.eup %1198 }
0x10c2   :  { %v941_v44 = vmul.f32 %v1199_v43, %v924_v34  ;;  %vm946_vm3 = vweird.f32 %v1199_v43  ;;  %v963_v57 = vmul.f32 %v959_v56, %v938_v41 }
0x10c3   :  { %vm947_vm5 = vmor %vm945_vm4, %vm946_vm3 }
0x10c4   :  { %v942_v45 = vsub.f32 1.0, %v941_v44 }
0x10c6   :  { %v943_v46 = vmul.f32 %v1199_v43, %v942_v45 }
0x10c8   :  { %v944_v47 = vadd.f32 %v1199_v43, %v943_v46 }
0x10ca   :  { %v948_v50 = vsel %vm947_vm5, %v1199_v43, %v944_v47 }
0x10cb   :  { %v953_v53 = vsel %vm950_vm6, %v952_v51, %v948_v50 }
0x10cc   :  { %v964_v62 = vmul.f32 %v960_v61, %v953_v53 }
0x1107   :  { %v968_v37 = vpop.permute.xlu2 %967 }
0x1108   :  { %v973_v42 = vmul.f32 %v968_v37, %v938_v41 }
0x110a   :  { %977 = vrot.lane.b32.xlu1 %v973_v42, %s1262_s1 }
0x1112   :  { %999 = vrot.lane.b32.xlu1 %v1075_v55, %s1263_s21 }
0x1120   :  { %v970_v52 = vpop.permute.xlu1 %969 }
0x1121   :  { %v974_v54 = vmul.f32 %v970_v52, %v953_v53 }
0x1123   :  { %979 = vrot.lane.b32.xlu0 %v974_v54, %s1262_s1 }
0x117c   :  { %v978_v58 = vpop.permute.xlu1 %977 }
0x117d   :  { %v983_v59 = vadd.f32 %v978_v58, %v963_v57 }
0x117f   :  { %1200 = vtanh.f32 %v983_v59 }
0x1184   :  { %v1000_v4 = vpop.permute.xlu1 %999 }
0x1185   :  { %v1201_v60 = vpop.eup %1200 }
0x1186   :  { %989 = vrot.lane.b32.xlu0 %v1201_v60, %s1261_s0 }
0x1195   :  { %v980_v63 = vpop.permute.xlu0 %979 }
0x1196   :  { %v984_v0 = vadd.f32 %v980_v63, %v964_v62 }
0x1198   :  { %1202 = vtanh.f32 %v984_v0 }
0x119e   :  { %v1203_v1 = vpop.eup %1202 }
0x119f   :  { %991 = vrot.lane.b32.xlu2 %v1203_v1, %s1261_s0 }
0x11f8   :  { %v990_v2 = vpop.permute.xlu0 %989 }
0x11f9   :  { %v992_v5 = vpop.permute.xlu2 %991  ;;  %v995_v3 = vmul.f32 %v990_v2, %v938_v41 }
0x11fa   :  { %v996_v6 = vmul.f32 %v992_v5, %v953_v53 }
0x11fb   :  { %v1002_v7 = vmul.f32 %v1000_v4, %v995_v3 }
0x11fc   :  { %v1003_v9 = vmul.f32 %v1000_v4, %v996_v6 }
0x11fd   :  { %1007 = vrot.lane.b32.xlu2 %v1002_v7, %s1262_s1 }
0x11fe   :  { %v1006_v10 = vrot.slane %v1003_v9, 7 }
0x1200   :  { %1009 = vrot.lane.b32.xlu0 %v1006_v10, %s1262_s1 }
0x1257   :  { %v1008_v8 = vpop.permute.xlu2 %1007 }
0x1258   :  { %v1014_v11 = vsel %vm1013_vm7, %v1008_v8, 0.0 }
0x1259   :  { %1015 = vadd.xlane.f32.xlu1 %v1014_v11 }
0x1272   :  { %v1010_v12 = vpop.permute.xlu0 %1009 }
0x1273   :  { %v1018_v14 = vsel %vm1017_vm8, %v1010_v12, 0.0 }
0x1274   :  { %1019 = vadd.xlane.f32.xlu2 %v1018_v14 }
0x12cc   :  { %v1016_v17 = vpop.xlane.xlu1 %1015 }
0x12cd   :  { %v1021_v18 = vadd.f32 %v1075_v55, %v1016_v17 }
0x12cf   :  { %1025 = vrot.lane.b32.xlu0 %v1021_v18, %s1263_s21 }
0x12e7   :  { %v1020_v20 = vpop.xlane.xlu2 %1019 }
0x12e8   :  { %v1022_v16 = vadd.f32 %v1075_v55, %v1020_v20 }
0x12ea   :  { %1027 = vrot.lane.b32.xlu0 %v1022_v16, %s1263_s21 }
0x1341   :  { %v1026_v19 = vpop.permute.xlu0 %1025 }
0x1342   :  { %1032 = vst.msk [vmem:[%s1445_s2 - $0x7] sm:$0x80] %vm1031_vm11, %v1026_v19 }
0x135c   :  { %v1028_v21 = vpop.permute.xlu0 %1027 }
0x135d   :  { %1034 = vst.msk [vmem:[%s1445_s2 + $0x1] sm:$0x1] %vm1033_vm12, %v1028_v21 }
0x135e   :  { %1039 = vsyncpa [#allocation3], 1 }
0x135f   :  { %1040 = vsyncpa [#allocation5], 1 }

</bundles_post_ra>
